<compile_context>
chip_gen: v5e
topology: v5e:2x2
jax: 0.10.0
libtpu: 0.0.40
codegen_flags: <defaults>
</compile_context>

<pallas_src>
import jax
import jax.numpy as jnp
from jax.experimental import pallas as pl
from jax.experimental.pallas import tpu as pltpu


# ---------------------------------------------------------------------------
# Kernel: out = LayerNorm(x @ W^T + b + residual) * gamma + beta   (eps = 1e-12)
# ---------------------------------------------------------------------------
def bert_output_kernel(x_ref, wt_ref, p_ref, res_ref, o_ref):
    # Linear: (tm, K) @ (K, N) -> (tm, N), f32 accumulation on the MXU.
    h = jnp.dot(x_ref[...], wt_ref[...], preferred_element_type=jnp.float32)

    p = p_ref[...]  # (3, N) f32: rows = [bias, gamma, beta]
    h = h + p[0:1, :] + res_ref[...].astype(jnp.float32)

    # One-pass LayerNorm stats over the hidden (last) dim: E[x^2] - mean^2.
    inv_n = jnp.float32(1.0 / h.shape[-1])
    s1 = jnp.sum(h, axis=-1, keepdims=True)
    s2 = jnp.sum(h * h, axis=-1, keepdims=True)
    mean = s1 * inv_n
    var = jnp.maximum(s2 * inv_n - mean * mean, 0.0)
    inv_std = jax.lax.rsqrt(var + 1e-12)

    o_ref[...] = ((h - mean) * inv_std * p[1:2, :] + p[2:3, :]).astype(o_ref.dtype)


# ---------------------------------------------------------------------------
# Parameter prep (do ONCE, outside the hot path)
# ---------------------------------------------------------------------------
def prepare_params(weight, bias, gamma, beta):
    """weight: [N, K] (torch nn.Linear convention); bias/gamma/beta: [N]."""
    wt = jnp.asarray(weight).T  # [K, N] — transpose once, cache
    packed = jnp.stack(
        [
            jnp.asarray(bias, jnp.float32).reshape(-1),
            jnp.asarray(gamma, jnp.float32).reshape(-1),
            jnp.asarray(beta, jnp.float32).reshape(-1),
        ],
        axis=0,
    )  # (3, N) f32
    return wt, packed


def _round_up(x, m):
    return ((x + m - 1) // m) * m


def _device_defaults():
    """(default row tile, tensorcores per chip, looks-like-v6e)"""
    try:
        kind = jax.devices()[0].device_kind.lower()
    except Exception:  # pragma: no cover
        kind = ""
    is_v5e = ("v5 lite" in kind) or ("v5e" in kind) or ("v5litepod" in kind)
    is_v6 = ("v6" in kind) or ("trillium" in kind)
    is_v7 = "v7" in kind
    cores = 2 if is_v7 else 1
    tm = 512 if (is_v5e or is_v6) else 256
    return tm, cores, is_v6


def _vmem_cap_bytes():
    """Generation-aware scoped-VMEM cap (never exceed physical; leave headroom)."""
    try:
        cap = int(pltpu.get_tpu_info().vmem_capacity_bytes)
    except Exception:  # pragma: no cover
        cap = 64 << 20  # conservative: v7x physical VMEM
    return max(32 << 20, int(cap * 0.75))


def _vmem_bytes(tm, K, N, x_isz, r_isz, w_isz, stream_bufs, const_bufs):
    return (
        stream_bufs * tm * K * x_isz          # x row tile
        + stream_bufs * tm * N * r_isz        # residual row tile
        + 2 * tm * N * 2                      # output tile (bf16, double-buffered)
        + const_bufs * K * N * w_isz          # weight^T (resident)
        + const_bufs * 3 * N * 4              # packed bias/gamma/beta (f32)
    )


# ---------------------------------------------------------------------------
# Wrapper
# ---------------------------------------------------------------------------
def tt_bert_output(hidden_state, residual, prepared_params, *, tm=None):
    """
    hidden_state: [B, S, K]  (output of the intermediate FF, bf16)
    residual    : [B, S, N]  (the "input" arg in the torch forward, bf16)
    prepared_params: (weight_T [K, N], packed f32 [3, N] = bias/gamma/beta)
    returns     : [B, S, N]  bf16
    """
    wt, pk = prepared_params
    B, S, K = hidden_state.shape
    N = wt.shape[1]
    M = B * S

    tm_default, cores, is_v6e = _device_defaults()
    if tm is None:
        tm = tm_default

    # Small-M handling: single step on 1-TC chips; even 2-step split on 2-TC v7x.
    # 16-row granularity keeps bf16 tiles at/above the (16, 128) packed tile.
    if M <= tm:
        if cores > 1 and M >= 32:
            tm = _round_up(pl.cdiv(M, 2), 16)  # exactly 2 grid steps -> both TCs busy
        else:
            tm = _round_up(M, 16)              # one grid step, no extra overhead

    # Make sure worst-case buffering fits the generation-aware VMEM cap.
    vmem_cap = _vmem_cap_bytes()
    x_isz = hidden_state.dtype.itemsize
    r_isz = residual.dtype.itemsize
    w_isz = wt.dtype.itemsize
    while tm > 16 and _vmem_bytes(tm, K, N, x_isz, r_isz, w_isz, 3, 2) > vmem_cap:
        tm = max(16, _round_up(tm // 2, 16))

    grid = pl.cdiv(M, tm)  # ragged last block handled by Pallas masking (no jnp.pad)

    x2d = hidden_state.reshape(M, K)
    res2d = residual.reshape(M, N)

    cost = pl.CostEstimate(
        flops=2 * M * K * N,
        transcendentals=0,
        bytes_accessed=(
            M * K * x_isz + M * N * r_isz + K * N * w_isz + M * N * 2 + 3 * N * 4
        ),
    )

    def _run(use_modes):
        stream_mode = pl.Buffered(3) if (use_modes and is_v6e) else None
        const_mode = pl.Buffered(1) if use_modes else None
        stream_bufs = 3 if (use_modes and is_v6e) else 2
        const_bufs = 1 if use_modes else 2

        vmem_need = _vmem_bytes(tm, K, N, x_isz, r_isz, w_isz, stream_bufs, const_bufs)
        vmem_limit = int(min(vmem_cap, max(32 << 20, vmem_need + (4 << 20))))

        def spec(shape, idx, mode):
            if mode is None:
                return pl.BlockSpec(shape, idx)
            return pl.BlockSpec(shape, idx, pipeline_mode=mode)

        return pl.pallas_call(
            bert_output_kernel,
            out_shape=jax.ShapeDtypeStruct((M, N), jnp.bfloat16),
            grid_spec=pltpu.PrefetchScalarGridSpec(
                num_scalar_prefetch=0,
                grid=(grid,),
                in_specs=[
                    spec((tm, K), lambda i: (i, 0), stream_mode),  # x row tile
                    spec((K, N), lambda i: (0, 0), const_mode),    # weight^T (resident)
                    spec((3, N), lambda i: (0, 0), const_mode),    # bias/gamma/beta f32
                    spec((tm, N), lambda i: (i, 0), stream_mode),  # residual row tile
                ],
                out_specs=pl.BlockSpec((tm, N), lambda i: (i, 0)),
            ),
            compiler_params=pltpu.CompilerParams(
                dimension_semantics=("parallel",),
                vmem_limit_bytes=vmem_limit,
            ),
            cost_estimate=cost,
        )(x2d, wt, pk, res2d)

    try:
        out2d = _run(True)
    except Exception:
        # Fallback if this JAX build rejects pipeline_mode=Buffered(1)/(3).
        out2d = _run(False)

    return out2d.reshape(B, S, N)


# ---------------------------------------------------------------------------
# Pure-JAX reference
# ---------------------------------------------------------------------------
def reference(hidden_state, residual, weight, bias, gamma, beta):
    h = jnp.einsum(
        "bsk,nk->bsn", hidden_state.astype(jnp.float32), weight.astype(jnp.float32)
    ) + bias.astype(jnp.float32)
    h = h + residual.astype(jnp.float32)
    mean = jnp.mean(h, axis=-1, keepdims=True)
    var = jnp.mean((h - mean) ** 2, axis=-1, keepdims=True)
    normed = (h - mean) * jax.lax.rsqrt(var + 1e-12)
    return normed * gamma.astype(jnp.float32) + beta.astype(jnp.float32)


if __name__ == "__main__":
    # Small BERT-tiny-ish config: hidden=128, intermediate=512, batch=2, seq=8.
    B, S, HIDDEN, INTER = 2, 8, 128, 512

    key = jax.random.PRNGKey(0)
    k1, k2, k3, k4, k5, k6 = jax.random.split(key, 6)

    hidden_state = jax.random.normal(k1, (B, S, INTER), dtype=jnp.float32).astype(jnp.bfloat16)
    residual = jax.random.normal(k2, (B, S, HIDDEN), dtype=jnp.float32).astype(jnp.bfloat16)

    # Deterministic synthetic parameters (module __init__ loads dense + LayerNorm params).
    weight = (0.02 * jax.random.normal(k3, (HIDDEN, INTER), dtype=jnp.float32)).astype(jnp.bfloat16)
    bias = (0.01 * jax.random.normal(k4, (HIDDEN,), dtype=jnp.float32)).astype(jnp.bfloat16)
    gamma = (1.0 + 0.05 * jax.random.normal(k5, (HIDDEN,), dtype=jnp.float32)).astype(jnp.bfloat16)
    beta = (0.05 * jax.random.normal(k6, (HIDDEN,), dtype=jnp.float32)).astype(jnp.bfloat16)

    # TODO(synk): the ttnn host<->device layout round-trips (to_layout / from_device /
    # to_torch / torch_to_tt_tensor_rm) are pure data-movement in the original module
    # and have no JAX/Pallas equivalent; they are intentionally omitted.
    params = prepare_params(weight, bias, gamma, beta)  # transpose/cast/stack once
    out = tt_bert_output(hidden_state, residual, params)
    out = jax.block_until_ready(out)

    ref = reference(hidden_state, residual, weight, bias, gamma, beta)
    err = jnp.max(jnp.abs(out.astype(jnp.float32) - ref))
    assert err < 5e-2, f"mismatch vs reference: {err}"

    print("KERNEL_OK")
</pallas_src>

<mosaic_0001>
module attributes {stable_mosaic.version = 11 : i64} {
  func.func @bert_output_kernel(%arg0: i32, %arg1: memref<16x512xbf16, #tpu.memory_space<vmem>>, %arg2: memref<512x128xbf16, #tpu.memory_space<vmem>>, %arg3: memref<3x128xf32, #tpu.memory_space<vmem>>, %arg4: memref<16x128xbf16, #tpu.memory_space<vmem>>, %arg5: memref<16x128xbf16, #tpu.memory_space<vmem>>) attributes {dimension_semantics = [#tpu.dimension_semantics<parallel>], iteration_bounds = array<i64: 1>, scalar_prefetch = 0 : i64, scratch_operands = 0 : i64, tpu.core_type = #tpu.core_type<tc>, window_params = [{transform_indices = @transform_0, window_bounds = array<i64: 16, 512>}, {pipeline_mode = #tpu.pipeline_mode<synchronous>, transform_indices = @transform_1, window_bounds = array<i64: 512, 128>}, {pipeline_mode = #tpu.pipeline_mode<synchronous>, transform_indices = @transform_2, window_bounds = array<i64: 3, 128>}, {transform_indices = @transform_3, window_bounds = array<i64: 16, 128>}, {transform_indices = @transform_4, window_bounds = array<i64: 16, 128>}]} {
    %c0 = arith.constant 0 : index
    %c0_0 = arith.constant 0 : index
    %0 = vector.load %arg1[%c0, %c0_0] : memref<16x512xbf16, #tpu.memory_space<vmem>>, vector<16x512xbf16>
    %c0_1 = arith.constant 0 : index
    %c0_2 = arith.constant 0 : index
    %1 = vector.load %arg2[%c0_1, %c0_2] : memref<512x128xbf16, #tpu.memory_space<vmem>>, vector<512x128xbf16>
    %cst = arith.constant dense<0.000000e+00> : vector<16x128xf32>
    %2 = tpu.matmul %0, %1, %cst {dimension_numbers = #tpu.dot_dimension_numbers<[1], [0], [0], [1], [0, 0, 1, 1], [], []>} : vector<16x512xbf16>, vector<512x128xbf16>, vector<16x128xf32> -> vector<16x128xf32>
    %c0_3 = arith.constant 0 : index
    %c0_4 = arith.constant 0 : index
    %3 = vector.load %arg3[%c0_3, %c0_4] : memref<3x128xf32, #tpu.memory_space<vmem>>, vector<3x128xf32>
    %4 = vector.extract_strided_slice %3 {offsets = [0, 0], sizes = [1, 128], strides = [1, 1]} : vector<3x128xf32> to vector<1x128xf32>
    %5 = vector.broadcast %4 : vector<1x128xf32> to vector<16x128xf32>
    %6 = arith.addf %2, %5 : vector<16x128xf32>
    %c0_5 = arith.constant 0 : index
    %c0_6 = arith.constant 0 : index
    %7 = vector.load %arg4[%c0_5, %c0_6] : memref<16x128xbf16, #tpu.memory_space<vmem>>, vector<16x128xbf16>
    %8 = arith.extf %7 : vector<16x128xbf16> to vector<16x128xf32>
    %9 = arith.addf %6, %8 : vector<16x128xf32>
    %cst_7 = arith.constant dense<0.000000e+00> : vector<16xf32>
    %10 = vector.multi_reduction <add>, %9, %cst_7 [1] : vector<16x128xf32> to vector<16xf32>
    %11 = vector.shape_cast %10 : vector<16xf32> to vector<16x1xf32>
    %12 = arith.mulf %9, %9 : vector<16x128xf32>
    %cst_8 = arith.constant dense<0.000000e+00> : vector<16xf32>
    %13 = vector.multi_reduction <add>, %12, %cst_8 [1] : vector<16x128xf32> to vector<16xf32>
    %14 = vector.shape_cast %13 : vector<16xf32> to vector<16x1xf32>
    %cst_9 = arith.constant 7.812500e-03 : f32
    %15 = vector.broadcast %cst_9 : f32 to vector<16x1xf32>
    %16 = arith.mulf %11, %15 : vector<16x1xf32>
    %cst_10 = arith.constant 7.812500e-03 : f32
    %17 = vector.broadcast %cst_10 : f32 to vector<16x1xf32>
    %18 = arith.mulf %14, %17 : vector<16x1xf32>
    %19 = arith.mulf %16, %16 : vector<16x1xf32>
    %20 = arith.subf %18, %19 : vector<16x1xf32>
    %cst_11 = arith.constant 0.000000e+00 : f32
    %21 = vector.broadcast %cst_11 : f32 to vector<16x1xf32>
    %22 = arith.maximumf %20, %21 : vector<16x1xf32>
    %cst_12 = arith.constant 9.99999996E-13 : f32
    %23 = vector.broadcast %cst_12 : f32 to vector<16x1xf32>
    %24 = arith.addf %22, %23 : vector<16x1xf32>
    %25 = math.rsqrt %24 : vector<16x1xf32>
    %26 = vector.broadcast %16 : vector<16x1xf32> to vector<16x128xf32>
    %27 = arith.subf %9, %26 : vector<16x128xf32>
    %28 = vector.broadcast %25 : vector<16x1xf32> to vector<16x128xf32>
    %29 = arith.mulf %27, %28 : vector<16x128xf32>
    %30 = vector.extract_strided_slice %3 {offsets = [1, 0], sizes = [1, 128], strides = [1, 1]} : vector<3x128xf32> to vector<1x128xf32>
    %31 = vector.broadcast %30 : vector<1x128xf32> to vector<16x128xf32>
    %32 = arith.mulf %29, %31 : vector<16x128xf32>
    %33 = vector.extract_strided_slice %3 {offsets = [2, 0], sizes = [1, 128], strides = [1, 1]} : vector<3x128xf32> to vector<1x128xf32>
    %34 = vector.broadcast %33 : vector<1x128xf32> to vector<16x128xf32>
    %35 = arith.addf %32, %34 : vector<16x128xf32>
    %36 = arith.truncf %35 : vector<16x128xf32> to vector<16x128xbf16>
    %c0_13 = arith.constant 0 : index
    %c0_14 = arith.constant 0 : index
    %37 = vector.load %arg5[%c0_13, %c0_14] : memref<16x128xbf16, #tpu.memory_space<vmem>>, vector<16x128xbf16>
    tpu.vector_store %arg5[%c0_13, %c0_14], %36 {strides = array<i32>} : memref<16x128xbf16, #tpu.memory_space<vmem>>, vector<16x128xbf16>,
    return
  }
  func.func @transform_0(%arg0: i32) -> (i32, i32) {
    %c0_i32 = arith.constant 0 : i32
    %c0_i32_0 = arith.constant 0 : i32
    return %arg0, %c0_i32 : i32, i32
  }
  func.func @transform_1(%arg0: i32) -> (i32, i32) {
    %c0_i32 = arith.constant 0 : i32
    %c0_i32_0 = arith.constant 0 : i32
    %c0_i32_1 = arith.constant 0 : i32
    return %c0_i32, %c0_i32_0 : i32, i32
  }
  func.func @transform_2(%arg0: i32) -> (i32, i32) {
    %c0_i32 = arith.constant 0 : i32
    %c0_i32_0 = arith.constant 0 : i32
    %c0_i32_1 = arith.constant 0 : i32
    return %c0_i32, %c0_i32_0 : i32, i32
  }
  func.func @transform_3(%arg0: i32) -> (i32, i32) {
    %c0_i32 = arith.constant 0 : i32
    %c0_i32_0 = arith.constant 0 : i32
    return %arg0, %c0_i32 : i32, i32
  }
  func.func @transform_4(%arg0: i32) -> (i32, i32) {
    %c0_i32 = arith.constant 0 : i32
    %c0_i32_0 = arith.constant 0 : i32
    return %arg0, %c0_i32 : i32, i32
  }
}

module attributes {stable_mosaic.version = 11 : i64} {
  func.func @bert_output_kernel(%arg0: i32, %arg1: memref<16x512xbf16, #tpu.memory_space<vmem>>, %arg2: memref<512x128xbf16, #tpu.memory_space<vmem>>, %arg3: memref<3x128xf32, #tpu.memory_space<vmem>>, %arg4: memref<16x128xbf16, #tpu.memory_space<vmem>>, %arg5: memref<16x128xbf16, #tpu.memory_space<vmem>>) attributes {dimension_semantics = [#tpu.dimension_semantics<parallel>], iteration_bounds = array<i64: 1>, scalar_prefetch = 0 : i64, scratch_operands = 0 : i64, tpu.core_type = #tpu.core_type<tc>, window_params = [{transform_indices = @transform_0, window_bounds = array<i64: 16, 512>}, {pipeline_mode = #tpu.pipeline_mode<synchronous>, transform_indices = @transform_1, window_bounds = array<i64: 512, 128>}, {pipeline_mode = #tpu.pipeline_mode<synchronous>, transform_indices = @transform_2, window_bounds = array<i64: 3, 128>}, {transform_indices = @transform_3, window_bounds = array<i64: 16, 128>}, {transform_indices = @transform_4, window_bounds = array<i64: 16, 128>}]} {
    %c0 = arith.constant 0 : index
    %c0_0 = arith.constant 0 : index
    %0 = vector.load %arg1[%c0, %c0_0] : memref<16x512xbf16, #tpu.memory_space<vmem>>, vector<16x512xbf16>
    %c0_1 = arith.constant 0 : index
    %c0_2 = arith.constant 0 : index
    %1 = vector.load %arg2[%c0_1, %c0_2] : memref<512x128xbf16, #tpu.memory_space<vmem>>, vector<512x128xbf16>
    %cst = arith.constant dense<0.000000e+00> : vector<16x128xf32>
    %2 = tpu.matmul %0, %1, %cst {dimension_numbers = #tpu.dot_dimension_numbers<[1], [0], [0], [1], [0, 0, 1, 1], [], []>} : vector<16x512xbf16>, vector<512x128xbf16>, vector<16x128xf32> -> vector<16x128xf32>
    %c0_3 = arith.constant 0 : index
    %c0_4 = arith.constant 0 : index
    %3 = vector.load %arg3[%c0_3, %c0_4] : memref<3x128xf32, #tpu.memory_space<vmem>>, vector<3x128xf32>
    %4 = vector.extract_strided_slice %3 {offsets = [0, 0], sizes = [1, 128], strides = [1, 1]} : vector<3x128xf32> to vector<1x128xf32>
    %5 = vector.broadcast %4 : vector<1x128xf32> to vector<16x128xf32>
    %6 = arith.addf %2, %5 : vector<16x128xf32>
    %c0_5 = arith.constant 0 : index
    %c0_6 = arith.constant 0 : index
    %7 = vector.load %arg4[%c0_5, %c0_6] : memref<16x128xbf16, #tpu.memory_space<vmem>>, vector<16x128xbf16>
    %8 = arith.extf %7 : vector<16x128xbf16> to vector<16x128xf32>
    %9 = arith.addf %6, %8 : vector<16x128xf32>
    %cst_7 = arith.constant dense<0.000000e+00> : vector<16xf32>
    %10 = vector.multi_reduction <add>, %9, %cst_7 [1] : vector<16x128xf32> to vector<16xf32>
    %11 = vector.shape_cast %10 : vector<16xf32> to vector<16x1xf32>
    %12 = arith.mulf %9, %9 : vector<16x128xf32>
    %cst_8 = arith.constant dense<0.000000e+00> : vector<16xf32>
    %13 = vector.multi_reduction <add>, %12, %cst_8 [1] : vector<16x128xf32> to vector<16xf32>
    %14 = vector.shape_cast %13 : vector<16xf32> to vector<16x1xf32>
    %cst_9 = arith.constant 7.812500e-03 : f32
    %15 = vector.broadcast %cst_9 : f32 to vector<16x1xf32>
    %16 = arith.mulf %11, %15 : vector<16x1xf32>
    %cst_10 = arith.constant 7.812500e-03 : f32
    %17 = vector.broadcast %cst_10 : f32 to vector<16x1xf32>
    %18 = arith.mulf %14, %17 : vector<16x1xf32>
    %19 = arith.mulf %16, %16 : vector<16x1xf32>
    %20 = arith.subf %18, %19 : vector<16x1xf32>
    %cst_11 = arith.constant 0.000000e+00 : f32
    %21 = vector.broadcast %cst_11 : f32 to vector<16x1xf32>
    %22 = arith.maximumf %20, %21 : vector<16x1xf32>
    %cst_12 = arith.constant 9.99999996E-13 : f32
    %23 = vector.broadcast %cst_12 : f32 to vector<16x1xf32>
    %24 = arith.addf %22, %23 : vector<16x1xf32>
    %25 = math.rsqrt %24 : vector<16x1xf32>
    %26 = vector.broadcast %16 : vector<16x1xf32> to vector<16x128xf32>
    %27 = arith.subf %9, %26 : vector<16x128xf32>
    %28 = vector.broadcast %25 : vector<16x1xf32> to vector<16x128xf32>
    %29 = arith.mulf %27, %28 : vector<16x128xf32>
    %30 = vector.extract_strided_slice %3 {offsets = [1, 0], sizes = [1, 128], strides = [1, 1]} : vector<3x128xf32> to vector<1x128xf32>
    %31 = vector.broadcast %30 : vector<1x128xf32> to vector<16x128xf32>
    %32 = arith.mulf %29, %31 : vector<16x128xf32>
    %33 = vector.extract_strided_slice %3 {offsets = [2, 0], sizes = [1, 128], strides = [1, 1]} : vector<3x128xf32> to vector<1x128xf32>
    %34 = vector.broadcast %33 : vector<1x128xf32> to vector<16x128xf32>
    %35 = arith.addf %32, %34 : vector<16x128xf32>
    %36 = arith.truncf %35 : vector<16x128xf32> to vector<16x128xbf16>
    %c0_13 = arith.constant 0 : index
    %c0_14 = arith.constant 0 : index
    %37 = vector.load %arg5[%c0_13, %c0_14] : memref<16x128xbf16, #tpu.memory_space<vmem>>, vector<16x128xbf16>
    tpu.vector_store %arg5[%c0_13, %c0_14], %36 {strides = array<i32>} : memref<16x128xbf16, #tpu.memory_space<vmem>>, vector<16x128xbf16>,
    return
  }
  func.func @transform_0(%arg0: i32) -> (i32, i32) {
    %c0_i32 = arith.constant 0 : i32
    %c0_i32_0 = arith.constant 0 : i32
    return %arg0, %c0_i32 : i32, i32
  }
  func.func @transform_1(%arg0: i32) -> (i32, i32) {
    %c0_i32 = arith.constant 0 : i32
    %c0_i32_0 = arith.constant 0 : i32
    %c0_i32_1 = arith.constant 0 : i32
    return %c0_i32, %c0_i32_0 : i32, i32
  }
  func.func @transform_2(%arg0: i32) -> (i32, i32) {
    %c0_i32 = arith.constant 0 : i32
    %c0_i32_0 = arith.constant 0 : i32
    %c0_i32_1 = arith.constant 0 : i32
    return %c0_i32, %c0_i32_0 : i32, i32
  }
  func.func @transform_3(%arg0: i32) -> (i32, i32) {
    %c0_i32 = arith.constant 0 : i32
    %c0_i32_0 = arith.constant 0 : i32
    return %arg0, %c0_i32 : i32, i32
  }
  func.func @transform_4(%arg0: i32) -> (i32, i32) {
    %c0_i32 = arith.constant 0 : i32
    %c0_i32_0 = arith.constant 0 : i32
    return %arg0, %c0_i32 : i32, i32
  }
}

</mosaic_0001>

<bundles_post_ra>
// kernel: tpu_custom_call.1
= control target key start
LH: loop header
LB: loop body
LE: loop exit
PB: predicated region body
PF: predicated region fallthrough
CT: control target
= control target key end

     0   :  { %9 = vsyncpa [#allocation3], 0  ;;  %s893_s0 = inlined_call_operand.hbm [shape: bf16[16,512], index: 0, kind: input, shape index: {}]   ;;  %s894_s1 = inlined_call_operand.hbm [shape: bf16[512,128], index: 1, kind: input, shape index: {}]   ;;  %s895_s2 = inlined_call_operand.hbm [shape: f32[3,128], index: 2, kind: input, shape index: {}]   ;;  %s896_s3 = inlined_call_operand.hbm [shape: bf16[16,128], index: 3, kind: input, shape index: {}]   ;;  %s897_s4 = inlined_call_operand.hbm [shape: bf16[16,128], index: 4, kind: output, shape index: {}]  }
   0x1   :  { %10 = vsyncpa [#allocation6], 0 }
   0x2   :  { %11 = vsyncpa [#allocation9], 0  ;;  %s30_s17 = sshll.u32 %s894_s1, 4  ;;  %s31_s17 = int_to_ptr.hbm [resolvable:$true] %s30_s17 }
   0x3   :  { %12 = vsyncpa [#allocation4], 0  ;;  %s830_s18 = smov [#allocation5]   ;;  %s17_s22 = sshll.u32 %s893_s0, 4  ;;  %s18_s22 = int_to_ptr.hbm [resolvable:$true] %s17_s22 }
   0x4   :  { %s32_s19 = sshll.u32 %s830_s18, 4  ;;  %s831_s23 = smov 64   ;;  %s33_s19 = int_to_ptr.vmem [resolvable:$true] %s32_s19 }
   0x5   :  { %s832_s24 = smov 4   ;;  %s833_s25 = smov [#allocation2]  }
   0x6   :  { %38 = dma.hbm_to_vmem [thread:$0]  %s31_s17, 4096, %s33_s19, [#allocation6], %s831_s23, %s831_s23, %s832_s24  }
   0x7   :  { %s19_s26 = sshll.u32 %s833_s25, 4  ;;  %s834_s1 = smov 256   ;;  %s20_s26 = int_to_ptr.vmem [resolvable:$true] %s19_s26 }
   0x8   :  { %s835_s27 = smov 16   ;;  %s44_s30 = sshll.u32 %s895_s2, 4  ;;  %s45_s30 = int_to_ptr.hbm [resolvable:$true] %s44_s30 }
   0x9   :  { %25 = dma.hbm_to_vmem [thread:$0]  %s18_s22, 512, %s20_s26, [#allocation3], %s834_s1, %s834_s1, %s835_s27  }
   0xa   :  { %s836_s5 = smov [#allocation7]   ;;  %s54_s8 = sshll.u32 %s896_s3, 4  ;;  %s55_s8 = int_to_ptr.hbm [resolvable:$true] %s54_s8 }
   0xb   :  { %s46_s0 = sshll.u32 %s836_s5, 4  ;;  %s837_s9 = smov [#allocation8]   ;;  %s47_s0 = int_to_ptr.vmem [resolvable:$true] %s46_s0 }
   0xc   :  { %49 = dma.hbm_to_vmem [thread:$0]  %s45_s30, 64, %s47_s0, [#allocation6]  }
   0xd   :  { %s56_s10 = sshll.u32 %s837_s9, 4  ;;  %s57_s10 = int_to_ptr.vmem [resolvable:$true] %s56_s10 }
   0xe   :  { %62 = dma.hbm_to_vmem [thread:$0]  %s55_s8, 128, %s57_s10, [#allocation9], %s831_s23, %s831_s23, %s832_s24  }
   0xf   :  { %822 = dma.done.wait [#allocation3], 512  }
  0x10   :  { %823 = vsyncadd [#allocation3], 4294966784 }
  0x11   :  { %824 = dma.done.wait [#allocation6], 4160  }
  0x12   :  { %825 = vsyncadd [#allocation6], 4294963136 }
  0x13   :  { %826 = dma.done.wait [#allocation9], 128  }
  0x14   :  { %827 = vsyncadd [#allocation9], 4294967168  ;;  %v655_v0 = vld [vmem:[#allocation5 + $0x38] sm:$0xff]  ;;  %v654_v4 = vld [vmem:[#allocation5 + $0x30] sm:$0xff]  ;;  %s838_s2 = smov [#allocation10]   ;;  %s485_s13 = sshll.u32 %s897_s4, 4  ;;  %s486_s13 = int_to_ptr.hbm [resolvable:$true] %s485_s13 }
  0x15   :  { %v663_v1 = vld [vmem:[#allocation5 + $0x78] sm:$0xff]  ;;  %361 = vmatpush.bf16.msra.mxu0 %v655_v0  ;;  %v662_v5 = vld [vmem:[#allocation5 + $0x70] sm:$0xff]  ;;  %v653_v8 = vld [vmem:[#allocation5 + $0x28] sm:$0xff]  ;;  %s483_s3 = sshll.u32 %s838_s2, 4  ;;  %s484_s3 = int_to_ptr.vmem [resolvable:$true] %s483_s3 }
  0x16   :  { %v671_v2 = vld [vmem:[#allocation5 + $0xb8] sm:$0xff]  ;;  %375 = vmatpush.bf16.msra.mxu1 %v663_v1  ;;  %v670_v6 = vld [vmem:[#allocation5 + $0xb0] sm:$0xff]  ;;  %v661_v9 = vld [vmem:[#allocation5 + $0x68] sm:$0xff] }
  0x17   :  { %v679_v3 = vld [vmem:[#allocation5 + $0xf8] sm:$0xff]  ;;  %389 = vmatpush.bf16.msra.mxu2 %v671_v2  ;;  %v678_v7 = vld [vmem:[#allocation5 + $0xf0] sm:$0xff]  ;;  %v669_v10 = vld [vmem:[#allocation5 + $0xa8] sm:$0xff] }
  0x18   :  { %403 = vmatpush.bf16.msra.mxu3 %v679_v3  ;;  %v677_v11 = vld [vmem:[#allocation5 + $0xe8] sm:$0xff]  ;;  %v652_v12 = vld [vmem:[#allocation5 + $0x20] sm:$0xff]  ;;  %v651_v16 = vld [vmem:[#allocation5 + $0x18] sm:$0xff] }
  0x19   :  { %362 = vmatpush.bf16.msra.mxu0 %v654_v4  ;;  %v660_v13 = vld [vmem:[#allocation5 + $0x60] sm:$0xff]  ;;  %v659_v17 = vld [vmem:[#allocation5 + $0x58] sm:$0xff]  ;;  %v650_v20 = vld [vmem:[#allocation5 + $0x10] sm:$0xff] }
  0x1a   :  { %376 = vmatpush.bf16.msra.mxu1 %v662_v5  ;;  %v668_v14 = vld [vmem:[#allocation5 + $0xa0] sm:$0xff]  ;;  %v667_v18 = vld [vmem:[#allocation5 + $0x98] sm:$0xff]  ;;  %v658_v21 = vld [vmem:[#allocation5 + $0x50] sm:$0xff] }
  0x1b   :  { %390 = vmatpush.bf16.msra.mxu2 %v670_v6  ;;  %v676_v15 = vld [vmem:[#allocation5 + $0xe0] sm:$0xff]  ;;  %v675_v19 = vld [vmem:[#allocation5 + $0xd8] sm:$0xff]  ;;  %v666_v22 = vld [vmem:[#allocation5 + $0x90] sm:$0xff] }
  0x1c   :  { %404 = vmatpush.bf16.msra.mxu3 %v678_v7  ;;  %v674_v23 = vld [vmem:[#allocation5 + $0xd0] sm:$0xff]  ;;  %v649_v24 = vld [vmem:[#allocation5 + $0x8] sm:$0xff]  ;;  %v648_v28 = vld [vmem:[#allocation5] sm:$0xff] }
  0x1d   :  { %363 = vmatpush.bf16.msra.mxu0 %v653_v8  ;;  %v657_v25 = vld [vmem:[#allocation5 + $0x48] sm:$0xff]  ;;  %v656_v29 = vld [vmem:[#allocation5 + $0x40] sm:$0xff]  ;;  %v646_v33 = vld [vmem:[#allocation2 + $0xc] sm:$0xf0] }
  0x1e   :  { %377 = vmatpush.bf16.msra.mxu1 %v661_v9  ;;  %v665_v26 = vld [vmem:[#allocation5 + $0x88] sm:$0xff]  ;;  %v664_v30 = vld [vmem:[#allocation5 + $0x80] sm:$0xff]  ;;  %v504_v35 = vld [vmem:[#allocation2 + $0x10] sm:$0xf0] }
  0x1f   :  { %391 = vmatpush.bf16.msra.mxu2 %v669_v10  ;;  %v673_v27 = vld [vmem:[#allocation5 + $0xc8] sm:$0xff]  ;;  %v672_v31 = vld [vmem:[#allocation5 + $0xc0] sm:$0xff]  ;;  %v647_v37 = vld [vmem:[#allocation2 + $0x14] sm:$0xf0] }
  0x20   :  { %405 = vmatpush.bf16.msra.mxu3 %v677_v11  ;;  %v502_v32 = vld [vmem:[#allocation2] sm:$0xf]  ;;  %v644_v34 = vld [vmem:[#allocation2 + $0x4] sm:$0xf]  ;;  %v510_v36 = vld [vmem:[#allocation2 + $0x8] sm:$0xf] }
  0x21   :  { %364 = vmatpush.bf16.msra.mxu0 %v652_v12  ;;  %v645_v38 = vld [vmem:[#allocation2 + $0xc] sm:$0xf]  ;;  %v512_v39 = vld [vmem:[#allocation2 + $0x18] sm:$0xf0]  ;;  %v503_v40 = vor.u32 %v646_v33, %v502_v32  ;;  %v507_v41 = vor.u32 %v644_v34, %v504_v35  ;;  %v511_v42 = vor.u32 %v647_v37, %v510_v36  ;;  %v882_v44 = vld [vmem:[#allocation7] sm:$0x7] }
  0x22   :  { %378 = vmatpush.bf16.msra.mxu1 %v660_v13  ;;  %v515_v43 = vor.u32 %v645_v38, %v512_v39  ;;  %v148_v45 = vperm.slane %v882_v44, 0  ;;  %v681_v50 = vld [vmem:[#allocation8] sm:$0xff]   ;;  %v469_v34 = vperm.slane %v882_v44, 1  ;;  %v472_v39 = vperm.slane %v882_v44, 2 }
  0x23   :  { %392 = vmatpush.bf16.msra.mxu2 %v668_v14  ;;  %v682_v54 = vunpack.c.l.bf16 %v681_v50  ;;  %v683_v0 = vunpack.c.h.bf16 %v681_v50 }
  0x24   :  { %406 = vmatpush.bf16.msra.mxu3 %v676_v15 }
  0x25   :  { %365 = vmatpush.bf16.msra.mxu0 %v651_v16 }
  0x26   :  { %379 = vmatpush.bf16.msra.mxu1 %v659_v17 }
  0x27   :  { %393 = vmatpush.bf16.msra.mxu2 %v667_v18 }
  0x28   :  { %407 = vmatpush.bf16.msra.mxu3 %v675_v19 }
  0x29   :  { %366 = vmatpush.bf16.msra.mxu0 %v650_v20 }
  0x2a   :  { %380 = vmatpush.bf16.msra.mxu1 %v658_v21 }
  0x2b   :  { %394 = vmatpush.bf16.msra.mxu2 %v666_v22 }
  0x2c   :  { %408 = vmatpush.bf16.msra.mxu3 %v674_v23 }
  0x2d   :  { %367 = vmatpush.bf16.msra.mxu0 %v649_v24 }
  0x2e   :  { %381 = vmatpush.bf16.msra.mxu1 %v657_v25 }
  0x2f   :  { %395 = vmatpush.bf16.msra.mxu2 %v665_v26 }
  0x30   :  { %409 = vmatpush.bf16.msra.mxu3 %v673_v27 }
  0x31   :  { %368 = vmatpush.bf16.msra.mxu0 %v648_v28 }
  0x32   :  { %382 = vmatpush.bf16.msra.mxu1 %v656_v29 }
  0x33   :  { %396 = vmatpush.bf16.msra.mxu2 %v664_v30 }
  0x34   :  { %410 = vmatpush.bf16.msra.mxu3 %v672_v31  ;;  %369 = vmatmul.bf16.vlgmr.msra.gmra.mxu0 %v503_v40 }
  0x35   :  { %383 = vmatmul.bf16.vlgmr.msra.gmra.mxu1 %v507_v41 }
  0x36   :  { %397 = vmatmul.bf16.vlgmr.msra.gmra.mxu2 %v511_v42 }
  0x37   :  { %411 = vmatmul.bf16.vlgmr.msra.gmra.mxu3 %v515_v43 }
  0xb1   :  { %v370_v46 = vpop.f32.mrf.mxu0 }
  0xb2   :  { %v371_v47 = vadd.f32 %v370_v46, %v148_v45  ;;  %v384_v48 = vpop.f32.mrf.mxu1 }
  0xb4   :  { %v385_v49 = vadd.f32 %v384_v48, %v371_v47 }
  0xb9   :  { %v398_v51 = vpop.f32.mrf.mxu2  ;;  %v372_v55 = vpop.f32.mrf.mxu0 }
  0xba   :  { %v412_v52 = vpop.f32.mrf.mxu3  ;;  %v399_v53 = vadd.f32 %v398_v51, %v385_v49  ;;  %v373_v57 = vadd.f32 %v372_v55, %v148_v45  ;;  %v386_v59 = vpop.f32.mrf.mxu1 }
  0xbc   :  { %v413_v56 = vadd.f32 %v412_v52, %v399_v53  ;;  %v387_v60 = vadd.f32 %v386_v59, %v373_v57 }
  0xbe   :  { %v421_v58 = vadd.f32 %v682_v54, %v413_v56 }
  0xc0   :  { %423 = vadd.xlane.f32.xlu0 %v421_v58  ;;  %v427_v61 = vmul.f32 %v421_v58, %v421_v58 }
  0xc1   :  { %v400_v62 = vpop.f32.mrf.mxu2 }
  0xc2   :  { %v401_v63 = vadd.f32 %v400_v62, %v387_v60  ;;  %429 = vadd.xlane.f32.xlu1 %v427_v61  ;;  %v414_v1 = vpop.f32.mrf.mxu3 }
  0xc4   :  { %v415_v2 = vadd.f32 %v414_v1, %v401_v63 }
  0xc6   :  { %v422_v3 = vadd.f32 %v683_v0, %v415_v2 }
  0xc8   :  { %425 = vadd.xlane.f32.xlu0 %v422_v3  ;;  %v428_v4 = vmul.f32 %v422_v3, %v422_v3 }
  0xca   :  { %431 = vadd.xlane.f32.xlu1 %v428_v4 }
 0x133   :  { %v424_v5 = vpop.xlane.xlu0 %423 }
 0x134   :  { %v433_v6 = vmul.f32 0.0078125, %v424_v5 }
 0x135   :  { %v430_v7 = vpop.xlane.xlu1 %429 }
 0x136   :  { %v437_v8 = vmul.f32 %v433_v6, %v433_v6  ;;  %v435_v9 = vmul.f32 0.0078125, %v430_v7  ;;  %v465_v32 = vsub.f32 %v421_v58, %v433_v6 }
 0x138   :  { %v439_v10 = vsub.f32 %v435_v9, %v437_v8 }
 0x13a   :  { %v441_v11 = vmax.f32 %v439_v10, 0.0 }
 0x13b   :  { %v426_v12 = vpop.xlane.xlu0 %425 }
 0x13c   :  { %v443_v13 = vadd.f32 1e-12, %v441_v11  ;;  %v434_v14 = vmul.f32 0.0078125, %v426_v12 }
 0x13d   :  { %v432_v15 = vpop.xlane.xlu1 %431 }
 0x13e   :  { %698 = vrsqrt.f32 %v443_v13  ;;  %v438_v16 = vmul.f32 %v434_v14, %v434_v14  ;;  %v436_v17 = vmul.f32 0.0078125, %v432_v15  ;;  %vm451_vm1 = vweird.f32 %v443_v13 }
 0x13f   :  { %v466_v37 = vsub.f32 %v422_v3, %v434_v14 }
 0x140   :  { %v440_v18 = vsub.f32 %v436_v17, %v438_v16 }
 0x142   :  { %v442_v19 = vmax.f32 %v440_v18, 0.0 }
 0x144   :  { %v699_v20 = vpop.eup %698  ;;  %v444_v22 = vadd.f32 1e-12, %v442_v19 }
 0x145   :  { %v446_v21 = vmul.f32 %v699_v20, %v443_v13  ;;  %vm452_vm0 = vweird.f32 %v699_v20 }
 0x146   :  { %700 = vrsqrt.f32 %v444_v22  ;;  %vm453_vm2 = vmor %vm451_vm1, %vm452_vm0  ;;  %vm461_vm4 = vweird.f32 %v444_v22 }
 0x147   :  { %v447_v23 = vmul.f32 %v699_v20, %v446_v21 }
 0x149   :  { %v448_v24 = vmul.f32 0.5, %v447_v23 }
 0x14b   :  { %v449_v25 = vsub.f32 1.5, %v448_v24 }
 0x14c   :  { %v701_v26 = vpop.eup %700 }
 0x14d   :  { %v450_v27 = vmul.f32 %v699_v20, %v449_v25  ;;  %v456_v28 = vmul.f32 %v701_v26, %v444_v22  ;;  %vm462_vm3 = vweird.f32 %v701_v26 }
 0x14e   :  { %vm463_vm5 = vmor %vm461_vm4, %vm462_vm3 }
 0x14f   :  { %v457_v29 = vmul.f32 %v701_v26, %v456_v28  ;;  %v454_v30 = vsel %vm453_vm2, %v699_v20, %v450_v27 }
 0x150   :  { %v467_v35 = vmul.f32 %v465_v32, %v454_v30 }
 0x151   :  { %v458_v31 = vmul.f32 0.5, %v457_v29 }
 0x152   :  { %v470_v41 = vmul.f32 %v469_v34, %v467_v35 }
 0x153   :  { %v459_v33 = vsub.f32 1.5, %v458_v31 }
 0x154   :  { %v473_v43 = vadd.f32 %v472_v39, %v470_v41 }
 0x155   :  { %v460_v36 = vmul.f32 %v701_v26, %v459_v33 }
 0x157   :  { %v464_v38 = vsel %vm463_vm5, %v701_v26, %v460_v36 }
 0x158   :  { %v468_v40 = vmul.f32 %v466_v37, %v464_v38 }
 0x15a   :  { %v471_v42 = vmul.f32 %v469_v34, %v468_v40 }
 0x15c   :  { %v474_v45 = vadd.f32 %v472_v39, %v471_v42 }
 0x15e   :  { %v687_v46 = vpack.c.bf16 %v474_v45, %v473_v43 }
 0x160   :  { %688 = vst [vmem:[#allocation10] sm:$0xff] %v687_v46  }
 0x161   :  { %491 = dma.vmem_to_hbm [thread:$0]  %s484_s3, 128, %s486_s13, [#allocation4], %s831_s23, %s831_s23, %s832_s24  }
 0x162   :  { %828 = dma.done.wait [#allocation4], 128  }
 0x163   :  { %829 = vsyncadd [#allocation4], 4294967168 }
 0x164   :  { %496 = vsyncpa [#allocation3], 1 }
 0x165   :  { %497 = vsyncpa [#allocation6], 1 }
 0x166   :  { %498 = vsyncpa [#allocation9], 1 }
 0x167   :  { %499 = vsyncpa [#allocation4], 1 }

// kernel: tpu_custom_call.1
= control target key start
LH: loop header
LB: loop body
LE: loop exit
PB: predicated region body
PF: predicated region fallthrough
CT: control target
= control target key end

     0   :  { %9 = vsyncpa [#allocation3], 0  ;;  %s893_s0 = inlined_call_operand.hbm [shape: bf16[16,512], index: 0, kind: input, shape index: {}]   ;;  %s894_s1 = inlined_call_operand.hbm [shape: bf16[512,128], index: 1, kind: input, shape index: {}]   ;;  %s895_s2 = inlined_call_operand.hbm [shape: f32[3,128], index: 2, kind: input, shape index: {}]   ;;  %s896_s3 = inlined_call_operand.hbm [shape: bf16[16,128], index: 3, kind: input, shape index: {}]   ;;  %s897_s4 = inlined_call_operand.hbm [shape: bf16[16,128], index: 4, kind: output, shape index: {}]  }
   0x1   :  { %10 = vsyncpa [#allocation6], 0 }
   0x2   :  { %11 = vsyncpa [#allocation9], 0  ;;  %s30_s17 = sshll.u32 %s894_s1, 4  ;;  %s31_s17 = int_to_ptr.hbm [resolvable:$true] %s30_s17 }
   0x3   :  { %12 = vsyncpa [#allocation4], 0  ;;  %s830_s18 = smov [#allocation5]   ;;  %s17_s22 = sshll.u32 %s893_s0, 4  ;;  %s18_s22 = int_to_ptr.hbm [resolvable:$true] %s17_s22 }
   0x4   :  { %s32_s19 = sshll.u32 %s830_s18, 4  ;;  %s831_s23 = smov 64   ;;  %s33_s19 = int_to_ptr.vmem [resolvable:$true] %s32_s19 }
   0x5   :  { %s832_s24 = smov 4   ;;  %s833_s25 = smov [#allocation2]  }
   0x6   :  { %38 = dma.hbm_to_vmem [thread:$0]  %s31_s17, 4096, %s33_s19, [#allocation6], %s831_s23, %s831_s23, %s832_s24  }
   0x7   :  { %s19_s26 = sshll.u32 %s833_s25, 4  ;;  %s834_s1 = smov 256   ;;  %s20_s26 = int_to_ptr.vmem [resolvable:$true] %s19_s26 }
   0x8   :  { %s835_s27 = smov 16   ;;  %s44_s30 = sshll.u32 %s895_s2, 4  ;;  %s45_s30 = int_to_ptr.hbm [resolvable:$true] %s44_s30 }
   0x9   :  { %25 = dma.hbm_to_vmem [thread:$0]  %s18_s22, 512, %s20_s26, [#allocation3], %s834_s1, %s834_s1, %s835_s27  }
   0xa   :  { %s836_s5 = smov [#allocation7]   ;;  %s54_s8 = sshll.u32 %s896_s3, 4  ;;  %s55_s8 = int_to_ptr.hbm [resolvable:$true] %s54_s8 }
   0xb   :  { %s46_s0 = sshll.u32 %s836_s5, 4  ;;  %s837_s9 = smov [#allocation8]   ;;  %s47_s0 = int_to_ptr.vmem [resolvable:$true] %s46_s0 }
   0xc   :  { %49 = dma.hbm_to_vmem [thread:$0]  %s45_s30, 64, %s47_s0, [#allocation6]  }
   0xd   :  { %s56_s10 = sshll.u32 %s837_s9, 4  ;;  %s57_s10 = int_to_ptr.vmem [resolvable:$true] %s56_s10 }
   0xe   :  { %62 = dma.hbm_to_vmem [thread:$0]  %s55_s8, 128, %s57_s10, [#allocation9], %s831_s23, %s831_s23, %s832_s24  }
   0xf   :  { %822 = dma.done.wait [#allocation3], 512  }
  0x10   :  { %823 = vsyncadd [#allocation3], 4294966784 }
  0x11   :  { %824 = dma.done.wait [#allocation6], 4160  }
  0x12   :  { %825 = vsyncadd [#allocation6], 4294963136 }
  0x13   :  { %826 = dma.done.wait [#allocation9], 128  }
  0x14   :  { %827 = vsyncadd [#allocation9], 4294967168  ;;  %v655_v0 = vld [vmem:[#allocation5 + $0x38] sm:$0xff]  ;;  %v654_v4 = vld [vmem:[#allocation5 + $0x30] sm:$0xff]  ;;  %s838_s2 = smov [#allocation10]   ;;  %s485_s13 = sshll.u32 %s897_s4, 4  ;;  %s486_s13 = int_to_ptr.hbm [resolvable:$true] %s485_s13 }
  0x15   :  { %v663_v1 = vld [vmem:[#allocation5 + $0x78] sm:$0xff]  ;;  %361 = vmatpush.bf16.msra.mxu0 %v655_v0  ;;  %v662_v5 = vld [vmem:[#allocation5 + $0x70] sm:$0xff]  ;;  %v653_v8 = vld [vmem:[#allocation5 + $0x28] sm:$0xff]  ;;  %s483_s3 = sshll.u32 %s838_s2, 4  ;;  %s484_s3 = int_to_ptr.vmem [resolvable:$true] %s483_s3 }
  0x16   :  { %v671_v2 = vld [vmem:[#allocation5 + $0xb8] sm:$0xff]  ;;  %375 = vmatpush.bf16.msra.mxu1 %v663_v1  ;;  %v670_v6 = vld [vmem:[#allocation5 + $0xb0] sm:$0xff]  ;;  %v661_v9 = vld [vmem:[#allocation5 + $0x68] sm:$0xff] }
  0x17   :  { %v679_v3 = vld [vmem:[#allocation5 + $0xf8] sm:$0xff]  ;;  %389 = vmatpush.bf16.msra.mxu2 %v671_v2  ;;  %v678_v7 = vld [vmem:[#allocation5 + $0xf0] sm:$0xff]  ;;  %v669_v10 = vld [vmem:[#allocation5 + $0xa8] sm:$0xff] }
  0x18   :  { %403 = vmatpush.bf16.msra.mxu3 %v679_v3  ;;  %v677_v11 = vld [vmem:[#allocation5 + $0xe8] sm:$0xff]  ;;  %v652_v12 = vld [vmem:[#allocation5 + $0x20] sm:$0xff]  ;;  %v651_v16 = vld [vmem:[#allocation5 + $0x18] sm:$0xff] }
  0x19   :  { %362 = vmatpush.bf16.msra.mxu0 %v654_v4  ;;  %v660_v13 = vld [vmem:[#allocation5 + $0x60] sm:$0xff]  ;;  %v659_v17 = vld [vmem:[#allocation5 + $0x58] sm:$0xff]  ;;  %v650_v20 = vld [vmem:[#allocation5 + $0x10] sm:$0xff] }
  0x1a   :  { %376 = vmatpush.bf16.msra.mxu1 %v662_v5  ;;  %v668_v14 = vld [vmem:[#allocation5 + $0xa0] sm:$0xff]  ;;  %v667_v18 = vld [vmem:[#allocation5 + $0x98] sm:$0xff]  ;;  %v658_v21 = vld [vmem:[#allocation5 + $0x50] sm:$0xff] }
  0x1b   :  { %390 = vmatpush.bf16.msra.mxu2 %v670_v6  ;;  %v676_v15 = vld [vmem:[#allocation5 + $0xe0] sm:$0xff]  ;;  %v675_v19 = vld [vmem:[#allocation5 + $0xd8] sm:$0xff]  ;;  %v666_v22 = vld [vmem:[#allocation5 + $0x90] sm:$0xff] }
  0x1c   :  { %404 = vmatpush.bf16.msra.mxu3 %v678_v7  ;;  %v674_v23 = vld [vmem:[#allocation5 + $0xd0] sm:$0xff]  ;;  %v649_v24 = vld [vmem:[#allocation5 + $0x8] sm:$0xff]  ;;  %v648_v28 = vld [vmem:[#allocation5] sm:$0xff] }
  0x1d   :  { %363 = vmatpush.bf16.msra.mxu0 %v653_v8  ;;  %v657_v25 = vld [vmem:[#allocation5 + $0x48] sm:$0xff]  ;;  %v656_v29 = vld [vmem:[#allocation5 + $0x40] sm:$0xff]  ;;  %v646_v33 = vld [vmem:[#allocation2 + $0xc] sm:$0xf0] }
  0x1e   :  { %377 = vmatpush.bf16.msra.mxu1 %v661_v9  ;;  %v665_v26 = vld [vmem:[#allocation5 + $0x88] sm:$0xff]  ;;  %v664_v30 = vld [vmem:[#allocation5 + $0x80] sm:$0xff]  ;;  %v504_v35 = vld [vmem:[#allocation2 + $0x10] sm:$0xf0] }
  0x1f   :  { %391 = vmatpush.bf16.msra.mxu2 %v669_v10  ;;  %v673_v27 = vld [vmem:[#allocation5 + $0xc8] sm:$0xff]  ;;  %v672_v31 = vld [vmem:[#allocation5 + $0xc0] sm:$0xff]  ;;  %v647_v37 = vld [vmem:[#allocation2 + $0x14] sm:$0xf0] }
  0x20   :  { %405 = vmatpush.bf16.msra.mxu3 %v677_v11  ;;  %v502_v32 = vld [vmem:[#allocation2] sm:$0xf]  ;;  %v644_v34 = vld [vmem:[#allocation2 + $0x4] sm:$0xf]  ;;  %v510_v36 = vld [vmem:[#allocation2 + $0x8] sm:$0xf] }
  0x21   :  { %364 = vmatpush.bf16.msra.mxu0 %v652_v12  ;;  %v645_v38 = vld [vmem:[#allocation2 + $0xc] sm:$0xf]  ;;  %v512_v39 = vld [vmem:[#allocation2 + $0x18] sm:$0xf0]  ;;  %v503_v40 = vor.u32 %v646_v33, %v502_v32  ;;  %v507_v41 = vor.u32 %v644_v34, %v504_v35  ;;  %v511_v42 = vor.u32 %v647_v37, %v510_v36  ;;  %v882_v44 = vld [vmem:[#allocation7] sm:$0x7] }
  0x22   :  { %378 = vmatpush.bf16.msra.mxu1 %v660_v13  ;;  %v515_v43 = vor.u32 %v645_v38, %v512_v39  ;;  %v148_v45 = vperm.slane %v882_v44, 0  ;;  %v681_v50 = vld [vmem:[#allocation8] sm:$0xff]   ;;  %v469_v34 = vperm.slane %v882_v44, 1  ;;  %v472_v39 = vperm.slane %v882_v44, 2 }
  0x23   :  { %392 = vmatpush.bf16.msra.mxu2 %v668_v14  ;;  %v682_v54 = vunpack.c.l.bf16 %v681_v50  ;;  %v683_v0 = vunpack.c.h.bf16 %v681_v50 }
  0x24   :  { %406 = vmatpush.bf16.msra.mxu3 %v676_v15 }
  0x25   :  { %365 = vmatpush.bf16.msra.mxu0 %v651_v16 }
  0x26   :  { %379 = vmatpush.bf16.msra.mxu1 %v659_v17 }
  0x27   :  { %393 = vmatpush.bf16.msra.mxu2 %v667_v18 }
  0x28   :  { %407 = vmatpush.bf16.msra.mxu3 %v675_v19 }
  0x29   :  { %366 = vmatpush.bf16.msra.mxu0 %v650_v20 }
  0x2a   :  { %380 = vmatpush.bf16.msra.mxu1 %v658_v21 }
  0x2b   :  { %394 = vmatpush.bf16.msra.mxu2 %v666_v22 }
  0x2c   :  { %408 = vmatpush.bf16.msra.mxu3 %v674_v23 }
  0x2d   :  { %367 = vmatpush.bf16.msra.mxu0 %v649_v24 }
  0x2e   :  { %381 = vmatpush.bf16.msra.mxu1 %v657_v25 }
  0x2f   :  { %395 = vmatpush.bf16.msra.mxu2 %v665_v26 }
  0x30   :  { %409 = vmatpush.bf16.msra.mxu3 %v673_v27 }
  0x31   :  { %368 = vmatpush.bf16.msra.mxu0 %v648_v28 }
  0x32   :  { %382 = vmatpush.bf16.msra.mxu1 %v656_v29 }
  0x33   :  { %396 = vmatpush.bf16.msra.mxu2 %v664_v30 }
  0x34   :  { %410 = vmatpush.bf16.msra.mxu3 %v672_v31  ;;  %369 = vmatmul.bf16.vlgmr.msra.gmra.mxu0 %v503_v40 }
  0x35   :  { %383 = vmatmul.bf16.vlgmr.msra.gmra.mxu1 %v507_v41 }
  0x36   :  { %397 = vmatmul.bf16.vlgmr.msra.gmra.mxu2 %v511_v42 }
  0x37   :  { %411 = vmatmul.bf16.vlgmr.msra.gmra.mxu3 %v515_v43 }
  0xb1   :  { %v370_v46 = vpop.f32.mrf.mxu0 }
  0xb2   :  { %v371_v47 = vadd.f32 %v370_v46, %v148_v45  ;;  %v384_v48 = vpop.f32.mrf.mxu1 }
  0xb4   :  { %v385_v49 = vadd.f32 %v384_v48, %v371_v47 }
  0xb9   :  { %v398_v51 = vpop.f32.mrf.mxu2  ;;  %v372_v55 = vpop.f32.mrf.mxu0 }
  0xba   :  { %v412_v52 = vpop.f32.mrf.mxu3  ;;  %v399_v53 = vadd.f32 %v398_v51, %v385_v49  ;;  %v373_v57 = vadd.f32 %v372_v55, %v148_v45  ;;  %v386_v59 = vpop.f32.mrf.mxu1 }
  0xbc   :  { %v413_v56 = vadd.f32 %v412_v52, %v399_v53  ;;  %v387_v60 = vadd.f32 %v386_v59, %v373_v57 }
  0xbe   :  { %v421_v58 = vadd.f32 %v682_v54, %v413_v56 }
  0xc0   :  { %423 = vadd.xlane.f32.xlu0 %v421_v58  ;;  %v427_v61 = vmul.f32 %v421_v58, %v421_v58 }
  0xc1   :  { %v400_v62 = vpop.f32.mrf.mxu2 }
  0xc2   :  { %v401_v63 = vadd.f32 %v400_v62, %v387_v60  ;;  %429 = vadd.xlane.f32.xlu1 %v427_v61  ;;  %v414_v1 = vpop.f32.mrf.mxu3 }
  0xc4   :  { %v415_v2 = vadd.f32 %v414_v1, %v401_v63 }
  0xc6   :  { %v422_v3 = vadd.f32 %v683_v0, %v415_v2 }
  0xc8   :  { %425 = vadd.xlane.f32.xlu0 %v422_v3  ;;  %v428_v4 = vmul.f32 %v422_v3, %v422_v3 }
  0xca   :  { %431 = vadd.xlane.f32.xlu1 %v428_v4 }
 0x133   :  { %v424_v5 = vpop.xlane.xlu0 %423 }
 0x134   :  { %v433_v6 = vmul.f32 0.0078125, %v424_v5 }
 0x135   :  { %v430_v7 = vpop.xlane.xlu1 %429 }
 0x136   :  { %v437_v8 = vmul.f32 %v433_v6, %v433_v6  ;;  %v435_v9 = vmul.f32 0.0078125, %v430_v7  ;;  %v465_v32 = vsub.f32 %v421_v58, %v433_v6 }
 0x138   :  { %v439_v10 = vsub.f32 %v435_v9, %v437_v8 }
 0x13a   :  { %v441_v11 = vmax.f32 %v439_v10, 0.0 }
 0x13b   :  { %v426_v12 = vpop.xlane.xlu0 %425 }
 0x13c   :  { %v443_v13 = vadd.f32 1e-12, %v441_v11  ;;  %v434_v14 = vmul.f32 0.0078125, %v426_v12 }
 0x13d   :  { %v432_v15 = vpop.xlane.xlu1 %431 }
 0x13e   :  { %698 = vrsqrt.f32 %v443_v13  ;;  %v438_v16 = vmul.f32 %v434_v14, %v434_v14  ;;  %v436_v17 = vmul.f32 0.0078125, %v432_v15  ;;  %vm451_vm1 = vweird.f32 %v443_v13 }
 0x13f   :  { %v466_v37 = vsub.f32 %v422_v3, %v434_v14 }
 0x140   :  { %v440_v18 = vsub.f32 %v436_v17, %v438_v16 }
 0x142   :  { %v442_v19 = vmax.f32 %v440_v18, 0.0 }
 0x144   :  { %v699_v20 = vpop.eup %698  ;;  %v444_v22 = vadd.f32 1e-12, %v442_v19 }
 0x145   :  { %v446_v21 = vmul.f32 %v699_v20, %v443_v13  ;;  %vm452_vm0 = vweird.f32 %v699_v20 }
 0x146   :  { %700 = vrsqrt.f32 %v444_v22  ;;  %vm453_vm2 = vmor %vm451_vm1, %vm452_vm0  ;;  %vm461_vm4 = vweird.f32 %v444_v22 }
 0x147   :  { %v447_v23 = vmul.f32 %v699_v20, %v446_v21 }
 0x149   :  { %v448_v24 = vmul.f32 0.5, %v447_v23 }
 0x14b   :  { %v449_v25 = vsub.f32 1.5, %v448_v24 }
 0x14c   :  { %v701_v26 = vpop.eup %700 }
 0x14d   :  { %v450_v27 = vmul.f32 %v699_v20, %v449_v25  ;;  %v456_v28 = vmul.f32 %v701_v26, %v444_v22  ;;  %vm462_vm3 = vweird.f32 %v701_v26 }
 0x14e   :  { %vm463_vm5 = vmor %vm461_vm4, %vm462_vm3 }
 0x14f   :  { %v457_v29 = vmul.f32 %v701_v26, %v456_v28  ;;  %v454_v30 = vsel %vm453_vm2, %v699_v20, %v450_v27 }
 0x150   :  { %v467_v35 = vmul.f32 %v465_v32, %v454_v30 }
 0x151   :  { %v458_v31 = vmul.f32 0.5, %v457_v29 }
 0x152   :  { %v470_v41 = vmul.f32 %v469_v34, %v467_v35 }
 0x153   :  { %v459_v33 = vsub.f32 1.5, %v458_v31 }
 0x154   :  { %v473_v43 = vadd.f32 %v472_v39, %v470_v41 }
 0x155   :  { %v460_v36 = vmul.f32 %v701_v26, %v459_v33 }
 0x157   :  { %v464_v38 = vsel %vm463_vm5, %v701_v26, %v460_v36 }
 0x158   :  { %v468_v40 = vmul.f32 %v466_v37, %v464_v38 }
 0x15a   :  { %v471_v42 = vmul.f32 %v469_v34, %v468_v40 }
 0x15c   :  { %v474_v45 = vadd.f32 %v472_v39, %v471_v42 }
 0x15e   :  { %v687_v46 = vpack.c.bf16 %v474_v45, %v473_v43 }
 0x160   :  { %688 = vst [vmem:[#allocation10] sm:$0xff] %v687_v46  }
 0x161   :  { %491 = dma.vmem_to_hbm [thread:$0]  %s484_s3, 128, %s486_s13, [#allocation4], %s831_s23, %s831_s23, %s832_s24  }
 0x162   :  { %828 = dma.done.wait [#allocation4], 128  }
 0x163   :  { %829 = vsyncadd [#allocation4], 4294967168 }
 0x164   :  { %496 = vsyncpa [#allocation3], 1 }
 0x165   :  { %497 = vsyncpa [#allocation6], 1 }
 0x166   :  { %498 = vsyncpa [#allocation9], 1 }
 0x167   :  { %499 = vsyncpa [#allocation4], 1 }

</bundles_post_ra>
